<compile_context>
chip_gen: v7x
topology: tpu7x:2x2x1
jax: 0.10.0
libtpu: 0.0.40
codegen_flags: <defaults>
</compile_context>

<pallas_src>
import functools
import math

import jax
import jax.numpy as jnp
from jax.experimental import pallas as pl
from jax.experimental.pallas import tpu as pltpu


# ----------------------------- kernel body ----------------------------------


def se_kernel(x_ref, w1_ref, w2_ref, o_ref, acc_ref, *, inv_hw):
    """One grid step of the SE forward.

    x_ref  : [tb, tc, thw]     current (batch block, C block, HW chunk) of x
    w1_ref : [C, Cr]           Linear1.weight.T  (VMEM resident, constant map)
    w2_ref : [Cr, C]           Linear2.weight.T  (VMEM resident, constant map)
    o_ref  : [1, tb, C]        output block (resident across the j/k axes)
    acc_ref: [nc, tb, tc] f32  per-C-block running spatial sums (scratch)
    """
    j = pl.program_id(1)               # C-block index
    k = pl.program_id(2)               # HW-chunk index
    nj = pl.num_programs(1)
    nk = pl.num_programs(2)

    @pl.when(jnp.logical_and(j == 0, k == 0))
    def _init():
        acc_ref[...] = jnp.zeros_like(acc_ref)

    # Partial spatial sum of this chunk, accumulated in f32.  With the large
    # per-generation chunk sizes this reduce hides completely under the DMA.
    acc_ref[j] += jnp.sum(x_ref[...], axis=-1, dtype=jnp.float32)

    @pl.when(jnp.logical_and(j == nj - 1, k == nk - 1))
    def _finalize():
        nc, _, tc = acc_ref.shape
        # mean -> FC1 -> ReLU -> FC2 -> sigmoid, once per batch block.
        # FC1 is summed over C blocks with static weight slices, so no reshape
        # / relayout of the accumulator is ever needed.
        h = jnp.dot(acc_ref[0] * inv_hw, w1_ref[0:tc, :],
                    preferred_element_type=jnp.float32)
        for jj in range(1, nc):
            h = h + jnp.dot(acc_ref[jj] * inv_hw,
                            w1_ref[jj * tc:(jj + 1) * tc, :],
                            preferred_element_type=jnp.float32)
        h = jnp.maximum(h, 0.0)
        z = jnp.dot(h, w2_ref[...], preferred_element_type=jnp.float32)
        o_ref[...] = jax.nn.sigmoid(z)[None].astype(o_ref.dtype)


# --------------------------- tiling heuristics -------------------------------


def _vmem_capacity_bytes():
    """Physical VMEM per TensorCore (fallbacks if the query is unavailable)."""
    try:
        info = pltpu.get_tpu_info()
        for name in ("vmem_capacity_bytes", "vmem_size_bytes", "vmem_bytes"):
            v = getattr(info, name, None)
            if v:
                return int(v)
    except Exception:
        pass
    try:
        kind = jax.devices()[0].device_kind.lower()
        if "v7" in kind:
            return 64 << 20
    except Exception:
        pass
    return 128 << 20


def _largest_divisor_leq(n, limit):
    limit = max(1, min(n, limit))
    for d in range(limit, 0, -1):
        if n % d == 0:
            return d
    return 1


def _pick_tb(b):
    """Batch block: <= 8, divides b, and leaves >= 2 blocks when possible
    (so v7x's two TensorCores both get work via the 'parallel' axis)."""
    cands = [d for d in range(1, min(b, 8) + 1) if b % d == 0]
    split = [d for d in cands if b // d >= 2]
    return max(split) if split else max(cands)


def _pick_tiles(tb, c, hw, itemsize, budget_bytes, min_piece_bytes):
    """Return (tc, thw) for the streamed block (tb, tc, thw)."""
    slab = tb * c * hw * itemsize
    if slab <= budget_bytes:
        return c, hw                                  # whole slab in one block

    # Prefer chunking C with full HW: every DMA piece is contiguous in NCHW,
    # and it works for any spatial size (last block dim == full dim).
    if c % 8 == 0 and tb * 8 * hw * itemsize <= budget_bytes:
        n8 = c // 8
        cap = budget_bytes // (tb * 8 * hw * itemsize)
        g = _largest_divisor_leq(n8, cap)
        return g * 8, hw

    # Otherwise stream HW chunks (needs 128-divisibility); keep each strided
    # piece at least ~min_piece_bytes so the DMA engine isn't descriptor-bound.
    if hw % 128 == 0:
        n128 = hw // 128
        cap = max(1, budget_bytes // (tb * c * itemsize * 128))
        min_g = max(1, -(-min_piece_bytes // (128 * itemsize)))
        g = _largest_divisor_leq(n128, max(cap, min_g))
        if g * 128 * itemsize < min_piece_bytes:
            bigger = [d for d in range(g, n128 + 1)
                      if n128 % d == 0 and d * 128 * itemsize >= min_piece_bytes]
            if bigger:
                g = bigger[0]
        return c, g * 128

    # TODO(synk): HW not 128-divisible, C not 8-divisible and slab over budget:
    # fall back to a full-extent block and rely on the raised VMEM limit.
    return c, hw


# ------------------------------- wrapper -------------------------------------


def se_layer(x, w1_t, w2_t, *, chunk_budget_bytes=None, min_piece_bytes=1024):
    """x: [B, C, H, W]; w1_t: [C, C//r]; w2_t: [C//r, C] -> [B, C, 1, 1]."""
    b, c, h, w = x.shape
    cr = w1_t.shape[1]
    hw = h * w
    x3 = x.reshape(b, c, hw)                       # free view: HW on the lane axis

    itemsize = jnp.dtype(x.dtype).itemsize
    vmem_cap = _vmem_capacity_bytes()
    if chunk_budget_bytes is None:
        # Per-buffer streaming budget.  Bigger chunks amortize the ~0.35us fixed
        # per-grid-step cost; v7x (64 MiB VMEM/TC) gets a smaller cap than
        # v5e/v6e (128 MiB), but still far more than the old 6 MiB default.
        chunk_budget_bytes = (14 << 20) if vmem_cap <= (64 << 20) else (24 << 20)

    tb = _pick_tb(b)
    tc, thw = _pick_tiles(tb, c, hw, itemsize, chunk_budget_bytes, min_piece_bytes)
    nc = c // tc
    grid = (b // tb, nc, hw // thw)

    # Derive the VMEM limit from what is actually allocated (the pipeline
    # double-buffers inputs and outputs) plus ~25% + 2 MiB headroom, clamped
    # to 3/4 of physical VMEM.
    w_itemsize = jnp.dtype(w1_t.dtype).itemsize
    need = (2 * tb * tc * thw * itemsize            # streamed input chunks
            + 2 * (c * cr + cr * c) * w_itemsize    # resident weights
            + 2 * tb * c * itemsize                 # output block
            + nc * tb * tc * 4)                     # f32 accumulator scratch
    vmem_limit = int(need * 1.25) + (2 << 20)
    vmem_limit = max(vmem_limit, 16 << 20)
    vmem_limit = min(vmem_limit, (vmem_cap * 3) // 4)

    kernel = functools.partial(se_kernel, inv_hw=1.0 / hw)

    y = pl.pallas_call(
        kernel,
        # (b//tb, tb, c): last two block dims always equal the full dims, so any
        # tb (including tb=1 for the v7x batch split) is layout-rule safe.
        out_shape=jax.ShapeDtypeStruct((b // tb, tb, c), x.dtype),
        grid_spec=pltpu.PrefetchScalarGridSpec(
            num_scalar_prefetch=0,
            grid=grid,
            in_specs=[
                pl.BlockSpec((tb, tc, thw), lambda i, j, k: (i, j, k)),
                pl.BlockSpec((c, cr), lambda i, j, k: (0, 0)),   # stays resident
                pl.BlockSpec((cr, c), lambda i, j, k: (0, 0)),   # stays resident
            ],
            out_specs=pl.BlockSpec((1, tb, c), lambda i, j, k: (i, 0, 0)),
            scratch_shapes=[pltpu.VMEM((nc, tb, tc), jnp.float32)],
        ),
        compiler_params=pltpu.CompilerParams(
            dimension_semantics=("parallel", "arbitrary", "arbitrary"),
            vmem_limit_bytes=vmem_limit,
        ),
    )(x3, w1_t, w2_t)
    return y.reshape(b, c, 1, 1)


# ----------------------------- reference & test ------------------------------


def _ref_forward(x, w1_t, w2_t):
    """Pure-JAX reference for correctness checking."""
    b, c, _, _ = x.shape
    y = jnp.mean(x.astype(jnp.float32), axis=(2, 3))
    y = jnp.maximum(y @ w1_t, 0.0)
    y = jax.nn.sigmoid(y @ w2_t)
    return y.reshape(b, c, 1, 1).astype(x.dtype)


if __name__ == "__main__":
    # Small shapes consistent with the module: channel=32, reduction=16 -> hidden=2.
    B, C, H, W = 2, 32, 16, 16
    reduction = 16
    Cr = C // reduction

    key = jax.random.PRNGKey(0)
    kx, k1, k2, kx2, kx3 = jax.random.split(key, 5)

    x = jax.random.normal(kx, (B, C, H, W), dtype=jnp.float32)

    # Deterministic init mimicking PyTorch's default Linear init
    # (uniform, bound = 1/sqrt(fan_in)), no bias.  Stored pre-transposed.
    bound1 = 1.0 / math.sqrt(C)
    bound2 = 1.0 / math.sqrt(Cr)
    w1_t = jax.random.uniform(k1, (C, Cr), minval=-bound1, maxval=bound1,
                              dtype=jnp.float32)   # Linear(C -> Cr).weight.T
    w2_t = jax.random.uniform(k2, (Cr, C), minval=-bound2, maxval=bound2,
                              dtype=jnp.float32)   # Linear(Cr -> C).weight.T

    ref = _ref_forward(x, w1_t, w2_t)

    # (1) Default per-generation budget: whole (tb, C, HW) slab in one block.
    out = jax.block_until_ready(se_layer(x, w1_t, w2_t))
    assert out.shape == (B, C, 1, 1), out.shape
    assert jnp.allclose(out, ref, atol=1e-5, rtol=1e-5), "mismatch (single slab)"

    # (2) Tiny budget -> contiguous C-blocking path (full HW, several C blocks).
    out_c = jax.block_until_ready(
        se_layer(x, w1_t, w2_t, chunk_budget_bytes=16 * 1024))
    assert jnp.allclose(out_c, ref, atol=1e-5, rtol=1e-5), "mismatch (C blocks)"

    # (3) Larger spatial input + tiny budget -> streamed HW-chunk path
    #     (multiple reduction steps along the innermost grid axis).
    xb = jax.random.normal(kx2, (B, C, 32, 32), dtype=jnp.float32)
    refb = _ref_forward(xb, w1_t, w2_t)
    out_hw = jax.block_until_ready(
        se_layer(xb, w1_t, w2_t, chunk_budget_bytes=16 * 1024))
    assert jnp.allclose(out_hw, refb, atol=1e-5, rtol=1e-5), "mismatch (HW chunks)"

    # (4) Spatial size not divisible by 128 + tiny budget -> C-blocking with the
    #     full ragged HW extent per block (the old fallback that ignored the
    #     budget is gone).
    xr = jax.random.normal(kx3, (B, C, 20, 20), dtype=jnp.float32)
    refr = _ref_forward(xr, w1_t, w2_t)
    out_r = jax.block_until_ready(
        se_layer(xr, w1_t, w2_t, chunk_budget_bytes=16 * 1024))
    assert jnp.allclose(out_r, refr, atol=1e-5, rtol=1e-5), "mismatch (ragged HW)"

    print("KERNEL_OK")
</pallas_src>

<mosaic_0001>
module attributes {stable_mosaic.version = 11 : i64} {
  func.func @se_kernel(%arg0: i32, %arg1: i32, %arg2: i32, %arg3: memref<1x32x256xf32, #tpu.memory_space<vmem>>, %arg4: memref<32x2xf32, #tpu.memory_space<vmem>>, %arg5: memref<2x32xf32, #tpu.memory_space<vmem>>, %arg6: memref<1x1x32xf32, #tpu.memory_space<vmem>>, %arg7: memref<1x1x32xf32, #tpu.memory_space<vmem>>) attributes {dimension_semantics = [#tpu.dimension_semantics<parallel>, #tpu.dimension_semantics<arbitrary>, #tpu.dimension_semantics<arbitrary>], iteration_bounds = array<i64: 2, 1, 1>, scalar_prefetch = 0 : i64, scratch_operands = 1 : i64, tpu.core_type = #tpu.core_type<tc>, window_params = [{transform_indices = @transform_0, window_bounds = array<i64: 1, 32, 256>}, {pipeline_mode = #tpu.pipeline_mode<synchronous>, transform_indices = @transform_1, window_bounds = array<i64: 32, 2>}, {pipeline_mode = #tpu.pipeline_mode<synchronous>, transform_indices = @transform_2, window_bounds = array<i64: 2, 32>}, {transform_indices = @transform_3, window_bounds = array<i64: 1, 1, 32>}]} {
    %c0_i32 = arith.constant 0 : i32
    %0 = arith.cmpi eq, %arg1, %c0_i32 : i32
    %c0_i32_0 = arith.constant 0 : i32
    %1 = arith.cmpi eq, %arg2, %c0_i32_0 : i32
    %2 = arith.andi %0, %1 : i1
    %3 = arith.extui %2 : i1 to i32
    %c0_i32_1 = arith.constant 0 : i32
    %4 = arith.cmpi ne, %3, %c0_i32_1 : i32
    scf.if %4 {
      %cst_11 = arith.constant 0.000000e+00 : f32
      %20 = vector.broadcast %cst_11 : f32 to vector<1x1x32xf32>
      %c0_12 = arith.constant 0 : index
      %c0_13 = arith.constant 0 : index
      %c0_14 = arith.constant 0 : index
      %21 = vector.load %arg7[%c0_12, %c0_13, %c0_14] : memref<1x1x32xf32, #tpu.memory_space<vmem>>, vector<1x1x32xf32>
      tpu.vector_store %arg7[%c0_12, %c0_13, %c0_14], %20 {strides = array<i32>} : memref<1x1x32xf32, #tpu.memory_space<vmem>>, vector<1x1x32xf32>,
    } else {
    }
    %5 = arith.index_cast %arg1 : i32 to index
    %c0 = arith.constant 0 : index
    %c0_2 = arith.constant 0 : index
    %6 = vector.load %arg7[%5, %c0, %c0_2] : memref<1x1x32xf32, #tpu.memory_space<vmem>>, vector<1x1x32xf32>
    %7 = vector.shape_cast %6 : vector<1x1x32xf32> to vector<1x32xf32>
    %c0_3 = arith.constant 0 : index
    %c0_4 = arith.constant 0 : index
    %c0_5 = arith.constant 0 : index
    %8 = vector.load %arg3[%c0_3, %c0_4, %c0_5] : memref<1x32x256xf32, #tpu.memory_space<vmem>>, vector<1x32x256xf32>
    %cst = arith.constant dense<0.000000e+00> : vector<1x32xf32>
    %9 = vector.multi_reduction <add>, %8, %cst [2] : vector<1x32x256xf32> to vector<1x32xf32>
    %10 = arith.addf %7, %9 : vector<1x32xf32>
    %11 = arith.index_cast %arg1 : i32 to index
    %c0_6 = arith.constant 0 : index
    %c0_7 = arith.constant 0 : index
    %12 = vector.load %arg7[%11, %c0_6, %c0_7] : memref<1x1x32xf32, #tpu.memory_space<vmem>>, vector<1x1x32xf32>
    %13 = vector.shape_cast %12 : vector<1x1x32xf32> to vector<1x32xf32>
    %14 = vector.shape_cast %10 : vector<1x32xf32> to vector<1x1x32xf32>
    tpu.vector_store %arg7[%11, %c0_6, %c0_7], %14 {strides = array<i32>} : memref<1x1x32xf32, #tpu.memory_space<vmem>>, vector<1x1x32xf32>,
    %c0_i32_8 = arith.constant 0 : i32
    %15 = arith.cmpi eq, %arg1, %c0_i32_8 : i32
    %c0_i32_9 = arith.constant 0 : i32
    %16 = arith.cmpi eq, %arg2, %c0_i32_9 : i32
    %17 = arith.andi %15, %16 : i1
    %18 = arith.extui %17 : i1 to i32
    %c0_i32_10 = arith.constant 0 : i32
    %19 = arith.cmpi ne, %18, %c0_i32_10 : i32
    scf.if %19 {
      %c0_11 = arith.constant 0 : index
      %c0_12 = arith.constant 0 : index
      %c0_13 = arith.constant 0 : index
      %20 = vector.load %arg7[%c0_11, %c0_12, %c0_13] : memref<1x1x32xf32, #tpu.memory_space<vmem>>, vector<1x1x32xf32>
      %21 = vector.shape_cast %20 : vector<1x1x32xf32> to vector<1x32xf32>
      %cst_14 = arith.constant 3.906250e-03 : f32
      %22 = vector.broadcast %cst_14 : f32 to vector<1x32xf32>
      %23 = arith.mulf %21, %22 : vector<1x32xf32>
      %c0_15 = arith.constant 0 : index
      %c0_16 = arith.constant 0 : index
      %24 = vector.load %arg4[%c0_15, %c0_16] : memref<32x2xf32, #tpu.memory_space<vmem>>, vector<32x2xf32>
      %cst_17 = arith.constant dense<0.000000e+00> : vector<1x2xf32>
      %25 = tpu.matmul %23, %24, %cst_17 {dimension_numbers = #tpu.dot_dimension_numbers<[1], [0], [0], [1], [0, 0, 1, 1], [], []>} : vector<1x32xf32>, vector<32x2xf32>, vector<1x2xf32> -> vector<1x2xf32>
      %cst_18 = arith.constant 0.000000e+00 : f32
      %26 = vector.broadcast %cst_18 : f32 to vector<1x2xf32>
      %27 = arith.maximumf %25, %26 : vector<1x2xf32>
      %c0_19 = arith.constant 0 : index
      %c0_20 = arith.constant 0 : index
      %28 = vector.load %arg5[%c0_19, %c0_20] : memref<2x32xf32, #tpu.memory_space<vmem>>, vector<2x32xf32>
      %cst_21 = arith.constant dense<0.000000e+00> : vector<1x32xf32>
      %29 = tpu.matmul %27, %28, %cst_21 {dimension_numbers = #tpu.dot_dimension_numbers<[1], [0], [0], [1], [0, 0, 1, 1], [], []>} : vector<1x2xf32>, vector<2x32xf32>, vector<1x32xf32> -> vector<1x32xf32>
      %30 = arith.negf %29 : vector<1x32xf32>
      %31 = math.exp %30 : vector<1x32xf32>
      %cst_22 = arith.constant 1.000000e+00 : f32
      %32 = vector.broadcast %cst_22 : f32 to vector<1x32xf32>
      %33 = arith.addf %32, %31 : vector<1x32xf32>
      %34 = arith.divf %32, %33 : vector<1x32xf32>
      %35 = vector.shape_cast %34 : vector<1x32xf32> to vector<1x1x32xf32>
      %c0_23 = arith.constant 0 : index
      %c0_24 = arith.constant 0 : index
      %c0_25 = arith.constant 0 : index
      %36 = vector.load %arg6[%c0_23, %c0_24, %c0_25] : memref<1x1x32xf32, #tpu.memory_space<vmem>>, vector<1x1x32xf32>
      tpu.vector_store %arg6[%c0_23, %c0_24, %c0_25], %35 {strides = array<i32>} : memref<1x1x32xf32, #tpu.memory_space<vmem>>, vector<1x1x32xf32>,
    } else {
    }
    return
  }
  func.func @transform_0(%arg0: i32, %arg1: i32, %arg2: i32) -> (i32, i32, i32) {
    %c0_i32 = arith.constant 0 : i32
    return %arg0, %arg1, %arg2 : i32, i32, i32
  }
  func.func @transform_1(%arg0: i32, %arg1: i32, %arg2: i32) -> (i32, i32) {
    %c0_i32 = arith.constant 0 : i32
    %c0_i32_0 = arith.constant 0 : i32
    %c0_i32_1 = arith.constant 0 : i32
    return %c0_i32, %c0_i32_0 : i32, i32
  }
  func.func @transform_2(%arg0: i32, %arg1: i32, %arg2: i32) -> (i32, i32) {
    %c0_i32 = arith.constant 0 : i32
    %c0_i32_0 = arith.constant 0 : i32
    %c0_i32_1 = arith.constant 0 : i32
    return %c0_i32, %c0_i32_0 : i32, i32
  }
  func.func @transform_3(%arg0: i32, %arg1: i32, %arg2: i32) -> (i32, i32, i32) {
    %c0_i32 = arith.constant 0 : i32
    %c0_i32_0 = arith.constant 0 : i32
    %c0_i32_1 = arith.constant 0 : i32
    return %arg0, %c0_i32, %c0_i32_0 : i32, i32, i32
  }
}

</mosaic_0001>

<bundles_post_ra>
// kernel: tpu_custom_call.1
= control target key start
LH: loop header
LB: loop body
LE: loop exit
PB: predicated region body
PF: predicated region fallthrough
CT: control target
= control target key end

     0   :  { %8 = vsyncpa [#allocation4], 0  ;;  %s1447_s0 = inlined_call_operand.hbm [shape: f32[2,32,256], index: 0, kind: input, shape index: {}]   ;;  %s1448_s1 = inlined_call_operand.vmem [shape: f32[32,2], index: 1, kind: input, shape index: {}]   ;;  %s1449_s2 = inlined_call_operand.vmem [shape: f32[2,32], index: 2, kind: input, shape index: {}]   ;;  %s1450_s3 = inlined_call_operand.hbm [shape: f32[2,1,32], index: 3, kind: output, shape index: {}]  }
   0x1   :  { %10 = vsyncpa [#allocation4 + $0x1], 0 }
   0x2   :  { %11 = vsyncpa [#allocation5], 0 }
   0x3   :  { %13 = vsyncpa [#allocation5 + $0x1], 0  ;;  %s1162_s12 = smov 0   ;;  %s1164_s13 = smov 0  }
   0x4   :  { %s1166_s14 = smov 0   ;;  %s1168_s15 = smov 0  }
   0x5   :  { %s1170_s16 = smov 0   ;;  %s1172_s17 = smov 0  }
   0x6 LB: > { %s898_s18 = sadd.s32 4294967295, %s1131_s17   ;;  %s899_s19 = sadd.s32 4294967294, %s1131_s17   ;;  %s1131_s17 = sphi %s1172_s17, %s19_s17   ;;  %s1127_s16 = sphi %s1170_s16, %s1465_s16   ;;  %s1123_s15 = sphi %s1168_s15, %s1464_s15   ;;  %s1119_s14 = sphi %s1166_s14, %s1463_s14   ;;  %s1115_s13 = sphi %s1164_s13, %s1462_s13   ;;  %s1111_s12 = sphi %s1162_s12, %s1461_s12  }
   0x7   : > { %s38_s20 = sadd.s32 1, %s1127_s16  ;;  %s49_s21 = sadd.s32 1, %s1119_s14 }
   0x8   : > { %p40_p0 = scmp.ge.s32.totalorder %s38_s20, 2  ;;  %p56_p1 = scmp.ne.s32.totalorder %s1119_s14, %s1115_s13 }
   0x9   : > { %p57_p2 = scmp.eq.s32.totalorder %s1131_s17, 0  ;;  %p62_p3 = scmp.ne.s32.totalorder %s1115_s13, %s1111_s12 }
   0xa   : > { %s1467_s20 = smov (%p40_p0, %s38_s20), 0  ;;  %p63_p5 = scmp.eq.s32.totalorder %s898_s18, 0 }
   0xb   : > { %p1203_p4 = por %p57_p2, %p56_p1  ;;  %s42_s23 = ssub.s32 %s1127_s16, %s1467_s20 }
   0xc   : > { %p128_p6 = scmp.eq.s32.totalorder %s898_s18, 1  ;;  %p47_p7 = scmp.eq.s32.totalorder %s42_s23, 0 }
   0xd   : > { %p1209_p8 = por %p63_p5, %p62_p3  ;;  %p134_p10 = scmp.eq.s32.totalorder %s899_s19, 1 }
   0xe   : > { %p1213_p9 = por %p128_p6, %p56_p1  ;;  %p956_p13 = scmp.lt.s32.totalorder %s1131_s17, 2 }
   0xf   : > { %s1218_s26 = scalar_select %p47_p7, %s1119_s14, %s49_s21  }
  0x10   : > { %s1454_s25 = scalar_select %p1213_p9, 1, 0 }
  0x11   : > { %p1220_p11 = por %p134_p10, %p62_p3  ;;  %s160_s28 = sand.u32 1, %s1119_s14  }
  0x12   : > { %s902_s29 = sshll.u32 %s160_s28, 6  ;;  %s914_s30 = sshll.u32 %s1127_s16, 10 }
  0x13   : > { %s1455_s27 = scalar_select %p1220_p11, 1, 0 }
  0x14   : > { %s1231_s6 = scalar_lea.hbm %s1447_s0, %s914_s30  ;;  %s164_s7 = scalar_lea.vmem [#allocation3], %s902_s29 }
  0x15   : > { %s176_s8 = sshll.u32 %s164_s7, 4  ;;  %p1237_p0 = pnand %p956_p13, %p1203_p4  ;;  %s1233_s8 = int_to_ptr.vmem [resolvable:$true] %s176_s8 }
  0x16   : > { %s1242_s10 = scalar_lea.sflag [#allocation4], %s160_s28  ;;  %s1019_s11 = scalar_lea.hbm %s1231_s6, 1024 }
  0x17   : > { %p1020_p2 = scmp.ne.s32.totalorder %s1231_s6, %s1019_s11  ;;  %p1021_p3 = pneg %p1237_p0 }
  0x18   : > { %s1024_s21 = scalar_lea.hbm %s1447_s0, 2048  ;;  %p1025_p4 = scmp.lt.u32.totalorder %s1231_s6, %s1447_s0 }
  0x19   : > { %p1022_p5 = pnand %p1021_p3, %p1020_p2  ;;  %p1026_p7 = scmp.lt.u32.totalorder %s1024_s21, %s1019_s11 }
  0x1a   : > { %p1028_p13 = scmp.lt.u32.totalorder %s1019_s11, %s1231_s6 }
  0x1b   : > { %p1023_p6 = pneg %p1022_p5  ;;  %p1027_p10 = por %p1026_p7, %p1025_p4 }
  0x1d   : > { %p1029_p12 = por %p1028_p13, %p1027_p10 }
  0x1f   : > { %p1030_p1 = pnand %p1029_p12, %p1023_p6 }
  0x21   : > { %1033 = shalt.err (!%p1030_p1)
}
  0x22   : > { %s1034_s28 = scalar_lea.vmem %s1233_s8, 1024  ;;  %s1133_s29 = smov [#allocation3]  }
  0x23   : > { %p1035_p2 = scmp.ne.s32.totalorder %s1233_s8, %s1034_s28  ;;  %s1039_s30 = sshll.u32 %s1133_s29, 4  ;;  %s1040_s30 = int_to_ptr.vmem [resolvable:$false] %s1039_s30 }
  0x24   : > { %s1041_s4 = scalar_lea.vmem %s1040_s30, 2048  ;;  %p1042_p9 = scmp.lt.s32.totalorder %s1233_s8, %s1040_s30 }
  0x25   : > { %p1037_p5 = pnand %p1035_p2, %p1021_p3  ;;  %p1043_p4 = scmp.lt.s32.totalorder %s1041_s4, %s1034_s28 }
  0x27   : > { %p1038_p11 = pneg %p1037_p5  ;;  %p1044_p7 = por %p1043_p4, %p1042_p9 }
  0x29   : > { %p1045_p10 = pnand %p1044_p7, %p1038_p11 }
  0x2b   : > { %1048 = shalt.err (!%p1045_p10)
}
  0x2c   : > { %s1134_s5 = smov 256   ;;  %s1135_s7 = smov 16  }
  0x2d   : > { %951 = dma.hbm_to_vmem [thread:$0]  (!%p1237_p0), %s1231_s6, 1024, %s1233_s8, %s1242_s10, %s1134_s5, %s1134_s5, %s1135_s7  }
  0x2e   : > { %p184_p12 = scmp.lt.s32.totalorder %s1131_s17, 3  ;;  %p1457_p1 = scmp.ge.s32.totalorder %s1131_s17, 1 }
  0x30   : > { %p185_p3 = pnand %p1457_p1, %p184_p12 }
  0x31   : > { %s1274_s11 = sand.u32 (!%p185_p3), 1, %s1115_s13  }
  0x32   : > { %188 = sbr.rel (%p185_p3) target bundleno = 844 (0x34c), region = 32  ;;  %s906_s18 = sshll.u32 (!%p185_p3), %s1274_s11, 6 }
  0x33   : > { %s191_s19 = scalar_lea.sflag (!%p185_p3), [#allocation4], %s1274_s11  ;;  %s194_s21 = scalar_lea.vmem (!%p185_p3), [#allocation3], %s906_s18 }
  0x39   : > { %1102 = dma.done.wait (%p1209_p8), %s191_s19, 1024  }
  0x3a   : > { %1104 = vsyncadd (%p1209_p8), %s191_s19, 4294966272  ;;  %v228_v0 = vld [vmem:[%s194_s21] sm:$0xff]  ;;  %v229_v1 = vld [vmem:[%s194_s21 + $0x8] sm:$0xff]  ;;  %v1136_v12 = vmov 0   ;;  %v252_v13 = vlaneseq  ;;  %v1137_v14 = vmov 1966171168  }
  0x3b   : > { %v230_v2 = vld [vmem:[%s194_s21 + $0x10] sm:$0xff]  ;;  %v236_v3 = vadd.f32 %v229_v1, %v228_v0  ;;  %v231_v4 = vld [vmem:[%s194_s21 + $0x18] sm:$0xff]  ;;  %v232_v5 = vld [vmem:[%s194_s21 + $0x20] sm:$0xff]  ;;  %1013 = vset.pattern.permute.xlu0 %v1136_v12  ;;  %1014 = vset.pattern.permute.xlu1 %v1136_v12  ;;  %v385_v15 = vunpack.c.l.s4 %v1137_v14  ;;  %vm224_vm0 = vcmask 253952   ;;  %vm1140_vm1 = vmmov 0   ;;  %s911_s4 = sshll.u32 %s1123_s15, 4 }
  0x3c   : > { %v233_v6 = vld [vmem:[%s194_s21 + $0x28] sm:$0xff]  ;;  %v234_v8 = vld [vmem:[%s194_s21 + $0x30] sm:$0xff]  ;;  %v235_v9 = vld [vmem:[%s194_s21 + $0x38] sm:$0xff]  ;;  %v239_v10 = vadd.f32 %v231_v4, %v230_v2  ;;  %v1283_v16 = vshrl.u32 %v252_v13, 7  ;;  %vm599_vm2 = vcmask 130112   ;;  %vm606_vm3 = vcmask 195712   ;;  %s1397_s21 = scalar_lea.hbm %s1450_s3, %s911_s4 }
  0x3d   : > { %v242_v7 = vadd.f32 %v233_v6, %v232_v5  ;;  %237 = vadd.xlane.f32.xlu0 %v236_v3  ;;  %v245_v11 = vadd.f32 %v235_v9, %v234_v8  ;;  %v386_v17 = vunpack.c.0.s8 %v385_v15  ;;  %vm613_vm4 = vcmask 261312   ;;  %s215_s5 = scalar_lea.vmem [#allocation6], %s1274_s11  ;;  %s803_s24 = scalar_lea.sflag [#allocation5], %s1274_s11 }
  0x3e   : > { %v1286_v18 = vsub.s32 0, %v1283_v16  ;;  %v1289_v19 = vsub.s32 1, %v1283_v16  ;;  %v1292_v20 = vsub.s32 2, %v1283_v16  ;;  %v1295_v21 = vsub.s32 3, %v1283_v16  ;;  %s815_s7 = sshll.u32 %s215_s5, 4  ;;  %p1458_p9 = scmp.ne.s32.totalorder %s1454_s25, 0  ;;  %s1399_s7 = int_to_ptr.vmem [resolvable:$true] %s815_s7 }
  0x3f   : > { %243 = vadd.xlane.f32.xlu1 %v242_v7  ;;  %v1298_v22 = vsub.s32 4, %v1283_v16  ;;  %v1301_v23 = vsub.s32 5, %v1283_v16  ;;  %v1304_v24 = vsub.s32 6, %v1283_v16  ;;  %v1307_v25 = vsub.s32 7, %v1283_v16  ;;  %s1049_s6 = scalar_lea.vmem %s1399_s7, 16  ;;  %s1141_s15 = smov [#allocation6]  }
  0x40   : > { %v1310_v27 = vsub.s32 %v386_v17, %v1283_v16  ;;  %vm641_vm5 = vcmask 261120   ;;  %vm721_vm6 = vcmask 1041408   ;;  %vm717_vm7 = vcmask 15360   ;;  %p1050_p8 = scmp.ne.s32.totalorder %s1399_s7, %s1049_s6  ;;  %s1053_s8 = sshll.u32 %s1141_s15, 4  ;;  %s1054_s8 = int_to_ptr.vmem [resolvable:$false] %s1053_s8 }
  0x41   : > { %240 = vadd.xlane.f32.xlu0 %v239_v10  ;;  %s1055_s9 = scalar_lea.vmem %s1054_s8, 32  ;;  %p1056_p6 = scmp.lt.s32.totalorder %s1399_s7, %s1054_s8 }
  0x42   : > { %p1051_p11 = pnand %p1050_p8, %p1458_p9  ;;  %p1057_p13 = scmp.lt.s32.totalorder %s1055_s9, %s1049_s6 }
  0x43   : > { %246 = vadd.xlane.f32.xlu1 %v245_v11 }
  0x44   : > { %p1052_p0 = pneg %p1051_p11  ;;  %p1058_p2 = por %p1057_p13, %p1056_p6 }
  0x46   : > { %p1059_p5 = pnand %p1058_p2, %p1052_p0 }
  0xca   : > { %v238_v26 = vpop.xlane.xlu0 %237 }
  0xcb   : > { %v255_v29 = vrot.slane %v238_v26, %v1286_v18  ;;  %v259_v30 = vrot.slane %v238_v26, %v1289_v19  ;;  %v263_v31 = vrot.slane %v238_v26, %v1292_v20  ;;  %v267_v32 = vrot.slane %v238_v26, %v1295_v21 }
  0xcc   : > { %v244_v28 = vpop.xlane.xlu1 %243  ;;  %v271_v33 = vrot.slane %v238_v26, %v1298_v22  ;;  %v275_v34 = vrot.slane %v238_v26, %v1301_v23  ;;  %v279_v35 = vrot.slane %v238_v26, %v1304_v24  ;;  %v283_v36 = vrot.slane %v238_v26, %v1307_v25 }
  0xcd   : > { %v380_v37 = vcombine.low %v255_v29, %v259_v30  ;;  %v381_v38 = vcombine.low %v263_v31, %v267_v32  ;;  %v319_v39 = vrot.slane %v244_v28, %v1286_v18  ;;  %v323_v40 = vrot.slane %v244_v28, %v1289_v19 }
  0xce   : > { %v241_v41 = vpop.xlane.xlu0 %240  ;;  %v382_v42 = vcombine.low %v271_v33, %v275_v34  ;;  %v383_v43 = vcombine.low %v279_v35, %v283_v36  ;;  %v327_v44 = vrot.slane %v244_v28, %v1292_v20  ;;  %v331_v45 = vrot.slane %v244_v28, %v1295_v21 }
  0xcf   : > { %v390_v46 = vrot.slane %v380_v37, %v1310_v27  ;;  %v397_v47 = vrot.slane %v381_v38, %v1310_v27  ;;  %v287_v48 = vrot.slane %v241_v41, %v1286_v18  ;;  %v291_v49 = vrot.slane %v241_v41, %v1289_v19 }
  0xd0   : > { %v404_v50 = vrot.slane %v382_v42, %v1310_v27  ;;  %v411_v51 = vrot.slane %v383_v43, %v1310_v27  ;;  %v295_v52 = vrot.slane %v241_v41, %v1292_v20  ;;  %v299_v53 = vrot.slane %v241_v41, %v1295_v21  ;;  %v247_v2 = vpop.xlane.xlu1 %246 }
  0xd1   : > { %v412_v54 = vcombine.low %v390_v46, %v397_v47  ;;  %v303_v55 = vrot.slane %v241_v41, %v1298_v22  ;;  %v307_v56 = vrot.slane %v241_v41, %v1301_v23  ;;  %v311_v57 = vrot.slane %v241_v41, %v1304_v24 }
  0xd2   : > { %v413_v58 = vcombine.low %v404_v50, %v411_v51  ;;  %v315_v59 = vrot.slane %v241_v41, %v1307_v25  ;;  %v429_v60 = vcombine.low %v287_v48, %v291_v49  ;;  %v430_v61 = vcombine.low %v295_v52, %v299_v53 }
  0xd3   : > { %v420_v62 = vrot.slane %v412_v54, %v1310_v27  ;;  %v431_v63 = vcombine.low %v303_v55, %v307_v56  ;;  %v335_v0 = vrot.slane %v244_v28, %v1298_v22  ;;  %v339_v1 = vrot.slane %v244_v28, %v1301_v23  ;;  %v637_v55 = vld [vmem:[%s1448_s1] sm:$0xff]  ;;  %v638_v56 = vld [vmem:[%s1448_s1 + $0x8] sm:$0xff] }
  0xd4   : > { %v427_v3 = vrot.slane %v413_v58, %v1310_v27  ;;  %v432_v4 = vcombine.low %v311_v57, %v315_v59  ;;  %v439_v5 = vrot.slane %v429_v60, %v1310_v27  ;;  %v446_v6 = vrot.slane %v430_v61, %v1310_v27  ;;  %v639_v57 = vld [vmem:[%s1448_s1 + $0x10] sm:$0xff]  ;;  %v640_v60 = vld [vmem:[%s1448_s1 + $0x18] sm:$0xff] }
  0xd5   : > { %v453_v7 = vrot.slane %v431_v63, %v1310_v27  ;;  %v343_v8 = vrot.slane %v244_v28, %v1304_v24  ;;  %v347_v9 = vrot.slane %v244_v28, %v1307_v25  ;;  %v478_v10 = vcombine.low %v319_v39, %v323_v40 }
  0xd6   : > { %v428_v11 = vcombine.low %v420_v62, %v427_v3  ;;  %v460_v12 = vrot.slane %v432_v4, %v1310_v27  ;;  %v461_v14 = vcombine.low %v439_v5, %v446_v6  ;;  %v479_v15 = vcombine.low %v327_v44, %v331_v45 }
  0xd7   : > { %v480_v17 = vcombine.low %v335_v0, %v339_v1  ;;  %v481_v26 = vcombine.low %v343_v8, %v347_v9  ;;  %v488_v29 = vrot.slane %v478_v10, %v1310_v27  ;;  %v351_v30 = vrot.slane %v247_v2, %v1286_v18 }
  0xd8   : > { %577 = vperm.xlu0 %1013, %v428_v11   ;;  %v462_v31 = vcombine.low %v453_v7, %v460_v12  ;;  %v469_v32 = vrot.slane %v461_v14, %v1310_v27  ;;  %v495_v33 = vrot.slane %v479_v15, %v1310_v27  ;;  %v355_v28 = vrot.slane %v247_v2, %v1289_v19 }
  0xd9   : > { %v502_v34 = vrot.slane %v480_v17, %v1310_v27  ;;  %v509_v35 = vrot.slane %v481_v26, %v1310_v27  ;;  %v359_v36 = vrot.slane %v247_v2, %v1292_v20  ;;  %v363_v37 = vrot.slane %v247_v2, %v1295_v21 }
  0xda   : > { %v476_v38 = vrot.slane %v462_v31, %v1310_v27  ;;  %v510_v39 = vcombine.low %v488_v29, %v495_v33  ;;  %v367_v18 = vrot.slane %v247_v2, %v1298_v22  ;;  %v371_v40 = vrot.slane %v247_v2, %v1301_v23  ;;  %v716_v33 = vld [vmem:[%s1449_s2] sm:$0x3] }
  0xdb   : > { %v511_v41 = vcombine.low %v502_v34, %v509_v35  ;;  %v375_v42 = vrot.slane %v247_v2, %v1304_v24  ;;  %v379_v19 = vrot.slane %v247_v2, %v1307_v25  ;;  %v527_v43 = vcombine.low %v351_v30, %v355_v28 }
  0xdc   : > { %v477_v44 = vcombine.low %v469_v32, %v476_v38  ;;  %v518_v45 = vrot.slane %v510_v39, %v1310_v27  ;;  %v528_v46 = vcombine.low %v359_v36, %v363_v37  ;;  %v529_v20 = vcombine.low %v367_v18, %v371_v40 }
  0xdd   : > { %v525_v21 = vrot.slane %v511_v41, %v1310_v27  ;;  %v530_v47 = vcombine.low %v375_v42, %v379_v19  ;;  %v537_v48 = vrot.slane %v527_v43, %v1310_v27  ;;  %v1138_v54 = vmov 0.0  }
  0xde   : > { %580 = vperm.xlu1 %1014, %v477_v44   ;;  %v544_v22 = vrot.slane %v528_v46, %v1310_v27  ;;  %v551_v23 = vrot.slane %v529_v20, %v1310_v27  ;;  %225 = vst.msk [vmem:[#allocation2] sm:$0x1] %vm224_vm0, %v1138_v54  ;;  %933 = vmatprep.subr.mxu1 %v1138_v54  ;;  %v1139_v58 = vmov 0.0|0.0   ;;  %v589_v62 = vand.u32 127, %v252_v13 }
  0xdf   : > { %v526_v49 = vcombine.low %v518_v45, %v525_v21  ;;  %v558_v24 = vrot.slane %v530_v47, %v1310_v27  ;;  %938 = vmatprep.subr.bf16.mxu0 %v1139_v58  ;;  %v939_v59 = vpack.c.bf16 %v638_v56, %v637_v55  ;;  %v942_v61 = vpack.c.bf16 %v640_v60, %v639_v57 }
  0xe0   : > { %v559_v25 = vcombine.low %v537_v48, %v544_v22  ;;  %930 = vmatprep.mubr.msk.f32.mxu0 %vm1140_vm1, %v1138_v54  ;;  %935 = vmatprep.mubr.msk.f32.mxu1 %vm1140_vm1, %v1138_v54  ;;  %v594_v63 = vadd.s32 4294967288, %v589_v62  ;;  %v601_v0 = vadd.s32 4294967280, %v589_v62  ;;  %v608_v3 = vadd.s32 4294967272, %v589_v62 }
  0xe1   : > { %v560_v50 = vcombine.low %v551_v23, %v558_v24  ;;  %940 = vmatpush3.bf16.msra.mxu0 %v939_v59  ;;  %v592_v5 = vsub.s32 %v589_v62, %v1283_v16  ;;  %934 = vmatpush3.msk.msra.mxu1 %vm721_vm6, %v716_v33 }
  0xe2   : > { %583 = vperm.xlu1 %1014, %v526_v49   ;;  %v567_v51 = vrot.slane %v559_v25, %v1310_v27  ;;  %941 = vmatprep.subr.bf16.mxu0 %v1139_v58  ;;  %v597_v2 = vsub.s32 %v594_v63, %v1283_v16  ;;  %v604_v4 = vsub.s32 %v601_v0, %v1283_v16 }
  0xe3   : > { %v574_v52 = vrot.slane %v560_v50, %v1310_v27  ;;  %v611_v9 = vsub.s32 %v608_v3, %v1283_v16 }
  0xe5   : > { %v575_v53 = vcombine.low %v567_v51, %v574_v52  ;;  %943 = vmatpush3.bf16.msra.mxu0 %v942_v61  ;;  %v227_v29 = vld [vmem:[#allocation2] sm:$0x1] }
  0xe7   : > { %586 = vperm.xlu1 %1014, %v575_v53  }
 0x157   : > { %v578_v7 = vpop.permute.xlu0 %577 }
 0x158   : > { %v593_v11 = vrot.slane %v578_v7, %v592_v5 }
 0x15d   : > { %v581_v1 = vpop.permute.xlu1 %580 }
 0x15e   : > { %v598_v8 = vrot.slane %v581_v1, %v597_v2 }
 0x160   : > { %v600_v12 = vsel %vm599_vm2, %v598_v8, %v593_v11 }
 0x161   : > { %v584_v6 = vpop.permute.xlu1 %583 }
 0x162   : > { %v605_v10 = vrot.slane %v584_v6, %v604_v4 }
 0x164   : > { %v607_v15 = vsel %vm606_vm3, %v605_v10, %v600_v12 }
 0x166   : > { %v587_v13 = vpop.permute.xlu1 %586 }
 0x167   : > { %v612_v14 = vrot.slane %v587_v13, %v611_v9 }
 0x169   : > { %v614_v17 = vsel %vm613_vm4, %v612_v14, %v607_v15 }
 0x16a   : > { %v621_v26 = vrot.slane %v614_v17, %v1310_v27 }
 0x16c   : > { %v628_v30 = vrot.slane %v621_v26, %v1310_v27 }
 0x16e   : > { %v630_v31 = vadd.f32 %v628_v30, %v227_v29 }
 0x170   : > { %632 = vst.msk [vmem:[#allocation2] sm:$0x1] %vm224_vm0, %v630_v31 }
 0x177   : > { %v635_v32 = vld [vmem:[#allocation2] sm:$0x1] }
 0x178   : > { %v636_v16 = vmul.f32 0.00390625, %v635_v32 }
 0x17a   : > { %931 = vmatmul.mubr.msk.f32.vlgmr.msra.gmra.mrb[0].mxu0 %vm641_vm5, %v636_v16 }
 0x24d   : > { %v711_v28 = vpop.f32.mrb[0].mxu0 }
 0x24e   : > { %v715_v34 = vmax.f32 %v711_v28, 0.0  ;;  %v932_v35 = vpop.f32.mrb[1].mxu0 }
 0x250   : > { %936 = vmatmul.mubr.msk.f32.vlgmr.msra.gmra.mrb[0].mxu1 %vm717_vm7, %v715_v34 }
 0x323   : > { %v791_v27 = vpop.f32.mrb[0].mxu1 }
 0x324   : > { %v910_v36 = vmul.f32 -1.442695, %v791_v27  ;;  %v937_v37 = vpop.f32.mrb[1].mxu1 }
 0x326   : > { %1015 = vpow2.f32 %v910_v36 }
 0x330   : > { %v1016_v38 = vpop.eup %1015 }
 0x331   : > { %v798_v39 = vadd.f32 1.0, %v1016_v38 }
 0x333   : > { %1017 = vrcp.f32 %v798_v39 }
 0x33d   : > { %v1018_v18 = vpop.eup %1017 }
 0x33e   : > { %801 = vst.msk [vmem:[%s215_s5] sm:$0x1] %vm224_vm0, %v1018_v18 }
 0x33f   : > { %1062 = shalt.err (!%p1059_p5)
}
 0x340   : > { %s1063_s11 = scalar_lea.hbm %s1397_s21, 16  ;;  %s1067_s23 = scalar_lea.hbm %s1450_s3, 32 }
 0x341   : > { %p1064_p4 = scmp.ne.s32.totalorder %s1397_s21, %s1063_s11  ;;  %p1068_p12 = scmp.lt.u32.totalorder %s1397_s21, %s1450_s3 }
 0x342   : > { %p1069_p1 = scmp.lt.u32.totalorder %s1067_s23, %s1063_s11  ;;  %p1071_p8 = scmp.lt.u32.totalorder %s1063_s11, %s1397_s21 }
 0x343   : > { %p1065_p7 = pnand %p1064_p4, %p1458_p9 }
 0x344   : > { %p1070_p3 = por %p1069_p1, %p1068_p12 }
 0x345   : > { %p1066_p10 = pneg %p1065_p7 }
 0x346   : > { %p1072_p11 = por %p1071_p8, %p1070_p3 }
 0x348   : > { %p1073_p0 = pnand %p1072_p11, %p1066_p10 }
 0x34a   : > { %1076 = shalt.err (!%p1073_p0)
}
 0x34b   : > { %946 = dma.vmem_to_hbm [thread:$0]  (%p1458_p9), %s1399_s7, 16, %s1397_s21, %s803_s24  }
 0x34c PF: > { %s827_s30 = sand.u32 1, %s1111_s12   ;;  %p1459_p6 = scmp.ne.s32.totalorder %s1455_s27, 0 }
 0x34d   : > { %p1460_p13 = scmp.ge.s32.totalorder %s1131_s17, 2  ;;  %s828_s4 = scalar_lea.sflag [#allocation5], %s827_s30 }
 0x34f   : > { %p953_p2 = pnand %p1460_p13, %p1459_p6 }
 0x351   : > { %1106 = dma.done.wait (!%p953_p2), %s828_s4, 16  }
 0x352   : > { %1108 = vsyncadd (!%p953_p2), %s828_s4, 4294967280  ;;  %s19_s17 = sadd.s32 1, %s1131_s17   ;;  %s1461_s12 = smov %s1115_s13 }
 0x353   : > { %p16_p5 = scmp.ge.s32.totalorder %s19_s17, 4   ;;  %s1462_s13 = smov %s1119_s14 }
 0x354   : > { %s1463_s14 = smov %s1218_s26  ;;  %s1464_s15 = smov %s1127_s16 }
 0x355   : > { %s1465_s16 = smov %s1467_s20  ;;  %18 = sbr.rel (!%p16_p5) target bundleno = 6 (0x6), region = 86 }
 0x35c   :  { %832 = vsyncpa [#allocation4], 1 }
 0x35d   :  { %834 = vsyncpa [#allocation4 + $0x1], 1 }
 0x35e   :  { %835 = vsyncpa [#allocation5], 1 }
 0x35f   :  { %837 = vsyncpa [#allocation5 + $0x1], 1 }

</bundles_post_ra>
